<compile_context>
chip_gen: v5e
topology: v5e:2x2
jax: 0.10.0
libtpu: 0.0.40
codegen_flags: <defaults>
</compile_context>

<pallas_src>
import numpy as np
import jax
import jax.numpy as jnp
from jax import lax
from jax.experimental import pallas as pl
from jax.experimental.pallas import tpu as pltpu


EDGE_TILE = 256                  # sweep 256-512 at scale (per-step overhead ~0.35us)
O_PAD = 128                      # output feature dim padded to a full lane group
VMEM_LIMIT = 64 * 1024 * 1024    # raise scoped-VMEM default (v5e 16MiB / v6e 32MiB)


def _round_up(x, m):
    return ((x + m - 1) // m) * m


# ----------------------- kernel 1: row-tiled linear ---------------------------

def _linear_kernel(x_ref, w_ref, b_ref, o_ref):
    o_ref[...] = (jnp.dot(x_ref[...], w_ref[...],
                          preferred_element_type=jnp.float32) + b_ref[...])


def linear_pallas(x_bf16, w_bf16, b_f32, *, row_tile):
    rows, k = x_bf16.shape
    n = w_bf16.shape[1]
    return pl.pallas_call(
        _linear_kernel,
        out_shape=jax.ShapeDtypeStruct((rows, n), jnp.float32),
        grid=(rows // row_tile,),
        in_specs=[
            pl.BlockSpec((row_tile, k), lambda i: (i, 0)),
            pl.BlockSpec((k, n), lambda i: (0, 0)),            # weights resident
            pl.BlockSpec((1, n), lambda i: (0, 0)),
        ],
        out_specs=pl.BlockSpec((row_tile, n), lambda i: (i, 0)),
        compiler_params=pltpu.CompilerParams(
            dimension_semantics=("parallel",)),
    )(x_bf16, w_bf16, b_f32)


# ---------------- kernel 2: per-edge features + lane-major logits -------------

def _edge_scores_kernel(cat_ref, w_fc_ref, b_fc_ref, w_a_ref, b_a_ref,
                        c_ref, e_ref):
    # fused fc over [src|dst|rel]: one K=3H bf16 MXU pass, O padded to 128 lanes
    c = (jnp.dot(cat_ref[...], w_fc_ref[...],
                 preferred_element_type=jnp.float32) + b_fc_ref[...])      # [T, Op]
    c_ref[...] = c
    # attention logit produced lane-major [1, T] via a trans-B dot_general, so the
    # small per-edge output is stored with full lane density (no masked vst).
    e = lax.dot_general(w_a_ref[...], c, (((1,), (1,)), ((), ())),
                        preferred_element_type=jnp.float32)                # [1, T]
    e = e + b_a_ref[0, 0]
    e_ref[...] = jnp.where(e >= 0.0, e, 0.01 * e)                          # leaky_relu


def edge_scores_pallas(cat_h_bf16, w_fc, b_fc, w_a_row, b_a, *, tile):
    b_pad, three_h = cat_h_bf16.shape
    o_pad = w_fc.shape[1]
    n_tiles = b_pad // tile
    return pl.pallas_call(
        _edge_scores_kernel,
        out_shape=(jax.ShapeDtypeStruct((b_pad, o_pad), jnp.float32),
                   jax.ShapeDtypeStruct((1, b_pad), jnp.float32)),
        grid=(n_tiles,),
        in_specs=[
            pl.BlockSpec((tile, three_h), lambda i: (i, 0)),     # cat_h tile (bf16)
            pl.BlockSpec((three_h, o_pad), lambda i: (0, 0)),    # w_fc resident (bf16)
            pl.BlockSpec((1, o_pad), lambda i: (0, 0)),          # b_fc
            pl.BlockSpec((1, o_pad), lambda i: (0, 0)),          # w_a row (O-padded)
            pl.BlockSpec(memory_space=pltpu.MemorySpace.SMEM),   # b_a scalar in SMEM
        ],
        out_specs=(
            pl.BlockSpec((tile, o_pad), lambda i: (i, 0)),       # c  (lane-dense)
            pl.BlockSpec((1, tile), lambda i: (0, i)),           # e  (lane-major)
        ),
        compiler_params=pltpu.CompilerParams(
            dimension_semantics=("parallel",),
            vmem_limit_bytes=VMEM_LIMIT),
    )(cat_h_bf16, w_fc, b_fc, w_a_row, b_a)


# ---------------- kernel 3: attention-weighted segment sum into h -------------

def _edge_aggregate_kernel(c_ref, alpha_ref, amat_ref, h_ref):
    @pl.when(pl.program_id(0) == 0)
    def _():
        h_ref[...] = jnp.zeros_like(h_ref)

    ac = (alpha_ref[...] * c_ref[...]).astype(jnp.bfloat16)                # [T, Op]
    # segment-sum over the edge axis on the MXU, accumulated directly in the
    # VMEM-resident output ref (constant index_map -> no scratch / per-step copy).
    h_ref[...] += lax.dot_general(amat_ref[...], ac,
                                  (((0,), (0,)), ((), ())),
                                  preferred_element_type=jnp.float32)      # [N, Op]


def edge_aggregate_pallas(c_all, alpha_col, amat_bf16, *, tile):
    b_pad, o_pad = c_all.shape
    n_pad = amat_bf16.shape[1]
    n_tiles = b_pad // tile
    return pl.pallas_call(
        _edge_aggregate_kernel,
        out_shape=jax.ShapeDtypeStruct((n_pad, o_pad), jnp.float32),
        grid=(n_tiles,),
        in_specs=[
            pl.BlockSpec((tile, o_pad), lambda i: (i, 0)),       # c tile
            pl.BlockSpec((tile, 1), lambda i: (i, 0)),           # alpha column
            pl.BlockSpec((tile, n_pad), lambda i: (i, 0)),       # bf16 incidence tile
        ],
        out_specs=pl.BlockSpec((n_pad, o_pad), lambda i: (0, 0)),
        compiler_params=pltpu.CompilerParams(
            dimension_semantics=("arbitrary",),
            vmem_limit_bytes=VMEM_LIMIT),
    )(c_all, alpha_col, amat_bf16)


# ---------------------- kernel 4: relation readout (one-shot) -----------------

def _rel_readout_kernel(rsrc_ref, rdst_ref, rrel_ref, h_ref, out_ref):
    h = h_ref[...]
    out_ref[0, :, :] = jnp.dot(rsrc_ref[...], h, preferred_element_type=jnp.float32)
    out_ref[1, :, :] = jnp.dot(rdst_ref[...], h, preferred_element_type=jnp.float32)
    out_ref[2, :, :] = rrel_ref[...]


def rel_readout_pallas(rsrc, rdst, rrel, h):
    r_pad, _ = rsrc.shape
    o_pad = h.shape[1]
    vm = pl.BlockSpec(memory_space=pltpu.MemorySpace.VMEM)
    return pl.pallas_call(
        _rel_readout_kernel,
        out_shape=jax.ShapeDtypeStruct((3, r_pad, o_pad), jnp.float32),
        in_specs=[vm, vm, vm, vm],
        out_specs=vm,
    )(rsrc, rdst, rrel, h)


# ------------------------------ host-side glue --------------------------------

def create_mappings(src, dst):
    nodes = list(dict.fromkeys(list(src) + list(dst)))
    return nodes, {n: i for i, n in enumerate(nodes)}


def get_batch_neighbors(src, dst):
    nbr = {}
    for e, (s, d) in enumerate(zip(src, dst)):
        nbr.setdefault(s, []).append(e)
        if d != s:
            nbr.setdefault(d, []).append(e)
    return nbr


def kgat_forward(params, src_ids, dst_ids, rel_ids, *, edge_tile=EDGE_TILE):
    (ent_embed, rel_embed, w_ent, b_ent, w_rel, b_rel,
     w_fc, b_fc, w_a, b_a, w_rel2, b_rel2) = params

    input_dim = ent_embed.shape[1]
    hidden_dim = w_ent.shape[1]
    output_dim = w_fc.shape[1]
    num_rels = rel_embed.shape[0]

    src_l = [int(s) for s in src_ids]
    dst_l = [int(d) for d in dst_ids]
    rel_l = [int(r) for r in rel_ids]
    batch = len(src_l)

    nodes, mapping = create_mappings(src_l, dst_l)
    n_nodes = len(nodes)

    b_pad = _round_up(batch, edge_tile)
    n_pad = _round_up(n_nodes, 128)            # lane-dense incidence / h
    r_all_pad = _round_up(num_rels, 8)

    src_loc = np.asarray([mapping[s] for s in src_l], np.int32)
    dst_loc = np.asarray([mapping[d] for d in dst_l], np.int32)
    rel_idx = np.asarray(rel_l, np.int32)

    # single bf16 incidence matrix: amat[e, mapping[n]] = 1 iff edge e touches n
    amat = np.zeros((b_pad, n_pad), np.float32)
    amat[np.arange(batch), src_loc] = 1.0
    amat[np.arange(batch), dst_loc] = 1.0
    amat_bf16 = jnp.asarray(amat, jnp.bfloat16)

    # relation -> list of edge indices (for the relation readout means)
    r2e = {}
    for e, r in enumerate(rel_l):
        r2e.setdefault(r, []).append(e)
    rel_keys = list(r2e.keys())
    n_rels_batch = len(rel_keys)
    r_pad = _round_up(n_rels_batch, 8)

    rsrc = np.zeros((r_pad, n_pad), np.float32)
    rdst = np.zeros((r_pad, n_pad), np.float32)
    for ri, r in enumerate(rel_keys):
        es = np.asarray(r2e[r], np.int32)
        w = np.float32(1.0 / es.size)
        np.add.at(rsrc, (ri, src_loc[es]), w)
        np.add.at(rdst, (ri, dst_loc[es]), w)

    # ---- kernel 1: projections once per UNIQUE node / relation (row-tiled) ----
    ent_nodes = np.zeros((n_pad, input_dim), np.float32)
    ent_nodes[:n_nodes] = np.asarray(ent_embed)[np.asarray(nodes)]
    rel_all = np.zeros((r_all_pad, input_dim), np.float32)
    rel_all[:num_rels] = np.asarray(rel_embed)

    ent_proj = linear_pallas(jnp.asarray(ent_nodes, jnp.bfloat16),
                             w_ent.astype(jnp.bfloat16), b_ent,
                             row_tile=min(128, n_pad))                    # [n_pad, H]
    rel_proj = linear_pallas(jnp.asarray(rel_all, jnp.bfloat16),
                             w_rel.astype(jnp.bfloat16), b_rel,
                             row_tile=r_all_pad)                          # [r_all, H]
    w_rel2_p = jnp.zeros((hidden_dim, O_PAD), jnp.float32).at[:, :output_dim].set(w_rel2)
    b_rel2_p = jnp.zeros((1, O_PAD), jnp.float32).at[:, :output_dim].set(b_rel2)
    rel_proj2 = linear_pallas(rel_proj.astype(jnp.bfloat16),
                              w_rel2_p.astype(jnp.bfloat16), b_rel2_p,
                              row_tile=r_all_pad)                         # [r_all, Op]

    # fused-concat activation [src|dst|rel] per edge (wrapper gather, zero pad rows)
    cat_real = jnp.concatenate([ent_proj[src_loc], ent_proj[dst_loc],
                                rel_proj[rel_idx]], axis=1)               # [B, 3H]
    cat_h = (jnp.zeros((b_pad, 3 * hidden_dim), jnp.float32)
             .at[:batch].set(cat_real).astype(jnp.bfloat16))

    # O-padded fc / attention weights (zero columns beyond output_dim)
    w_fc_p = jnp.zeros((3 * hidden_dim, O_PAD), jnp.float32).at[:, :output_dim].set(w_fc)
    b_fc_p = jnp.zeros((1, O_PAD), jnp.float32).at[:, :output_dim].set(b_fc)
    w_a_row = jnp.zeros((1, O_PAD), jnp.float32).at[:, :output_dim].set(w_a.reshape(1, -1))

    # ---- kernel 2: per-edge c (lane-dense) + lane-major logits e ---------------
    c_all, e_row = edge_scores_pallas(cat_h, w_fc_p.astype(jnp.bfloat16), b_fc_p,
                                      w_a_row, b_a.reshape(1, 1), tile=edge_tile)

    # ---- exact per-source-node softmax normalizer (O(B) XLA segment ops) -------
    e_real = e_row[0, :batch]
    src_j = jnp.asarray(src_loc)
    dst_j = jnp.asarray(dst_loc)
    dst_is_new = jnp.asarray(dst_loc != src_loc)
    m_node = jnp.full((n_pad,), -jnp.inf, jnp.float32)
    m_node = m_node.at[src_j].max(e_real)
    m_node = m_node.at[dst_j].max(jnp.where(dst_is_new, e_real, -jnp.inf))
    nsum = jnp.zeros((n_pad,), jnp.float32)
    nsum = nsum.at[src_j].add(jnp.exp(e_real - m_node[src_j]))
    nsum = nsum.at[dst_j].add(jnp.where(dst_is_new,
                                        jnp.exp(e_real - m_node[dst_j]), 0.0))
    alpha_real = jnp.exp(e_real - m_node[src_j]) / nsum[src_j]            # denom >= 1
    alpha_col = jnp.zeros((b_pad, 1), jnp.float32).at[:batch, 0].set(alpha_real)

    # ---- kernel 3: attention-weighted segment sum into h -----------------------
    h_pad = edge_aggregate_pallas(c_all, alpha_col, amat_bf16, tile=edge_tile)

    # ---- kernel 4: relation readout (means of h[src]/h[dst] + fc_rel2 slab) ----
    # Faithfully reproduces the reference's indexing of the *per-edge* fc_rel2
    # tensor with a relation id (requires every relation id < batch).
    for r in rel_keys:
        assert r < batch, "reference indexes the per-edge rel tensor with a relation id"
    rrel = jnp.zeros((r_pad, O_PAD), jnp.float32).at[:n_rels_batch].set(
        rel_proj2[jnp.asarray([rel_l[r] for r in rel_keys], jnp.int32)])
    rel3 = rel_readout_pallas(jnp.asarray(rsrc), jnp.asarray(rdst), rrel, h_pad)

    h_ent = h_pad[:n_nodes, :output_dim]
    rel_out = jnp.concatenate([rel3[0, :n_rels_batch, :output_dim],
                               rel3[1, :n_rels_batch, :output_dim],
                               rel3[2, :n_rels_batch, :output_dim]], axis=1)
    return h_ent, rel_out


# --------------------------- pure-numpy f64 reference --------------------------

def kgat_reference(params, src_l, dst_l, rel_l):
    (ent_embed, rel_embed, w_ent, b_ent, w_rel, b_rel,
     w_fc, b_fc, w_a, b_a, w_rel2, b_rel2) = [np.asarray(p, np.float64) for p in params]
    nodes, mapping = create_mappings(src_l, dst_l)
    neighbors = get_batch_neighbors(src_l, dst_l)
    src = ent_embed[src_l] @ w_ent + b_ent
    dst = ent_embed[dst_l] @ w_ent + b_ent
    rel = rel_embed[rel_l] @ w_rel + b_rel
    c = np.concatenate([src, dst, rel], axis=1) @ w_fc + b_fc
    e = (c @ w_a + b_a).reshape(-1)
    e = np.where(e >= 0.0, e, 0.01 * e)
    b = np.exp(e)
    b_sum = np.array([b[neighbors[s]].sum() for s in src_l])
    alpha = b / b_sum
    ac = alpha[:, None] * c
    h = np.stack([ac[neighbors[n]].sum(axis=0) for n in nodes])
    rel2 = rel @ w_rel2 + b_rel2
    r2e = {}
    for s, d, r in zip(src_l, dst_l, rel_l):
        r2e.setdefault(r, []).append((s, d))
    rel_out = np.stack([
        np.mean(np.stack([np.concatenate([h[mapping[s]], h[mapping[d]], rel2[r]])
                          for (s, d) in r2e[r]]), axis=0)
        for r in r2e.keys()])
    return h, rel_out


if __name__ == "__main__":
    input_dim, hidden_dim, output_dim = 16, 32, 32
    num_nodes, num_rels, batch = 40, 6, 300    # b_pad = 512 -> 2 edge tiles of 256

    key = jax.random.PRNGKey(0)
    ks = jax.random.split(key, 16)

    ent_embed = jax.random.normal(ks[0], (num_nodes, input_dim), jnp.float32)
    rel_embed = jax.random.normal(ks[1], (num_rels, input_dim), jnp.float32)
    w_ent  = 0.1 * jax.random.normal(ks[2], (input_dim, hidden_dim), jnp.float32)
    b_ent  = 0.1 * jax.random.normal(ks[3], (1, hidden_dim), jnp.float32)
    w_rel  = 0.1 * jax.random.normal(ks[4], (input_dim, hidden_dim), jnp.float32)
    b_rel  = 0.1 * jax.random.normal(ks[5], (1, hidden_dim), jnp.float32)
    w_fc   = 0.1 * jax.random.normal(ks[6], (3 * hidden_dim, output_dim), jnp.float32)
    b_fc   = 0.1 * jax.random.normal(ks[7], (1, output_dim), jnp.float32)
    w_a    = 0.1 * jax.random.normal(ks[8], (output_dim, 1), jnp.float32)
    b_a    = 0.1 * jax.random.normal(ks[9], (1, 1), jnp.float32)
    w_rel2 = 0.1 * jax.random.normal(ks[10], (hidden_dim, output_dim), jnp.float32)
    b_rel2 = 0.1 * jax.random.normal(ks[11], (1, output_dim), jnp.float32)
    # fc_rel3 is declared in the reference __init__ but never used in forward.

    src_ids = np.array(jax.random.randint(ks[12], (batch,), 0, num_nodes))
    dst_ids = np.array(jax.random.randint(ks[13], (batch,), 0, num_nodes))
    rel_ids = np.array(jax.random.randint(ks[14], (batch,), 0, num_rels))

    params = (ent_embed, rel_embed, w_ent, b_ent, w_rel, b_rel,
              w_fc, b_fc, w_a, b_a, w_rel2, b_rel2)

    h_ent, rel_out = kgat_forward(params, src_ids, dst_ids, rel_ids)
    h_ent = np.asarray(jax.block_until_ready(h_ent))
    rel_out = np.asarray(jax.block_until_ready(rel_out))

    h_ref, rel_ref = kgat_reference(params, src_ids.tolist(), dst_ids.tolist(),
                                    rel_ids.tolist())
    assert h_ent.shape == h_ref.shape and rel_out.shape == rel_ref.shape
    assert bool(np.all(np.isfinite(h_ent))) and bool(np.all(np.isfinite(rel_out)))
    # loose tolerance: bf16 MXU operands with f32 accumulation vs f64 reference
    np.testing.assert_allclose(h_ent, h_ref, rtol=5e-2, atol=5e-2)
    np.testing.assert_allclose(rel_out, rel_ref, rtol=5e-2, atol=5e-2)
    print("KERNEL_OK")
</pallas_src>

<mosaic_0001>
module attributes {stable_mosaic.version = 11 : i64} {
  func.func @_linear_kernel(%arg0: i32, %arg1: memref<128x16xbf16, #tpu.memory_space<vmem>>, %arg2: memref<16x32xbf16, #tpu.memory_space<vmem>>, %arg3: memref<1x32xf32, #tpu.memory_space<vmem>>, %arg4: memref<128x32xf32, #tpu.memory_space<vmem>>) attributes {dimension_semantics = [#tpu.dimension_semantics<parallel>], iteration_bounds = array<i64: 1>, scalar_prefetch = 0 : i64, scratch_operands = 0 : i64, tpu.core_type = #tpu.core_type<tc>, window_params = [{transform_indices = @transform_0, window_bounds = array<i64: 128, 16>}, {pipeline_mode = #tpu.pipeline_mode<synchronous>, transform_indices = @transform_1, window_bounds = array<i64: 16, 32>}, {pipeline_mode = #tpu.pipeline_mode<synchronous>, transform_indices = @transform_2, window_bounds = array<i64: 1, 32>}, {transform_indices = @transform_3, window_bounds = array<i64: 128, 32>}]} {
    %c0 = arith.constant 0 : index
    %c0_0 = arith.constant 0 : index
    %0 = vector.load %arg1[%c0, %c0_0] : memref<128x16xbf16, #tpu.memory_space<vmem>>, vector<128x16xbf16>
    %c0_1 = arith.constant 0 : index
    %c0_2 = arith.constant 0 : index
    %1 = vector.load %arg2[%c0_1, %c0_2] : memref<16x32xbf16, #tpu.memory_space<vmem>>, vector<16x32xbf16>
    %cst = arith.constant dense<0.000000e+00> : vector<128x32xf32>
    %2 = tpu.matmul %0, %1, %cst {dimension_numbers = #tpu.dot_dimension_numbers<[1], [0], [0], [1], [0, 0, 1, 1], [], []>} : vector<128x16xbf16>, vector<16x32xbf16>, vector<128x32xf32> -> vector<128x32xf32>
    %c0_3 = arith.constant 0 : index
    %c0_4 = arith.constant 0 : index
    %3 = vector.load %arg3[%c0_3, %c0_4] : memref<1x32xf32, #tpu.memory_space<vmem>>, vector<1x32xf32>
    %4 = vector.broadcast %3 : vector<1x32xf32> to vector<128x32xf32>
    %5 = arith.addf %2, %4 : vector<128x32xf32>
    %c0_5 = arith.constant 0 : index
    %c0_6 = arith.constant 0 : index
    %6 = vector.load %arg4[%c0_5, %c0_6] : memref<128x32xf32, #tpu.memory_space<vmem>>, vector<128x32xf32>
    tpu.vector_store %arg4[%c0_5, %c0_6], %5 {strides = array<i32>} : memref<128x32xf32, #tpu.memory_space<vmem>>, vector<128x32xf32>,
    return
  }
  func.func @transform_0(%arg0: i32) -> (i32, i32) {
    %c0_i32 = arith.constant 0 : i32
    %c0_i32_0 = arith.constant 0 : i32
    return %arg0, %c0_i32 : i32, i32
  }
  func.func @transform_1(%arg0: i32) -> (i32, i32) {
    %c0_i32 = arith.constant 0 : i32
    %c0_i32_0 = arith.constant 0 : i32
    %c0_i32_1 = arith.constant 0 : i32
    return %c0_i32, %c0_i32_0 : i32, i32
  }
  func.func @transform_2(%arg0: i32) -> (i32, i32) {
    %c0_i32 = arith.constant 0 : i32
    %c0_i32_0 = arith.constant 0 : i32
    %c0_i32_1 = arith.constant 0 : i32
    return %c0_i32, %c0_i32_0 : i32, i32
  }
  func.func @transform_3(%arg0: i32) -> (i32, i32) {
    %c0_i32 = arith.constant 0 : i32
    %c0_i32_0 = arith.constant 0 : i32
    return %arg0, %c0_i32 : i32, i32
  }
}

</mosaic_0001>

<bundles_post_ra>
// kernel: tpu_custom_call.1
= control target key start
LH: loop header
LB: loop body
LE: loop exit
PB: predicated region body
PF: predicated region fallthrough
CT: control target
= control target key end

     0   :  { %vm83_vm0 = vcmask 130048   ;;  %vm157_vm1 = vcmask 261120   ;;  %s357_s1 = inlined_call_operand.vmem [shape: bf16[16,32], index: 1, kind: input, shape index: {}]   ;;  %s358_s0 = inlined_call_operand.vmem [shape: bf16[128,16], index: 0, kind: input, shape index: {}]   ;;  %s359_s2 = inlined_call_operand.vmem [shape: f32[1,32], index: 2, kind: input, shape index: {}]   ;;  %s360_s3 = inlined_call_operand.vmem [shape: f32[128,32], index: 3, kind: output, shape index: {}]  }
   0x1   :  { %v230_v0 = vld [vmem:[%s357_s1] sm:$0xff]  ;;  %v224_v2 = vld [vmem:[%s358_s0 + $0x10] sm:$0xff]  ;;  %v223_v5 = vld [vmem:[%s358_s0 + $0x8] sm:$0xff] }
   0x2   :  { %v222_v1 = vld [vmem:[%s358_s0] sm:$0xff]  ;;  %115 = vmatpush.bf16.msra.mxu0 %v230_v0  ;;  %231 = vmatpush.bf16.msra.mxu1 %v230_v0  ;;  %v228_v4 = vld [vmem:[%s358_s0 + $0x30] sm:$0xff]  ;;  %v225_v6 = vld [vmem:[%s358_s0 + $0x18] sm:$0xff] }
   0x3   :  { %v226_v3 = vld [vmem:[%s358_s0 + $0x20] sm:$0xff]  ;;  %232 = vmatpush.bf16.msra.mxu2 %v230_v0  ;;  %233 = vmatpush.bf16.msra.mxu3 %v230_v0  ;;  %v227_v7 = vld [vmem:[%s358_s0 + $0x28] sm:$0xff]  ;;  %v229_v8 = vld [vmem:[%s358_s0 + $0x38] sm:$0xff] }
   0x4   :  { %v234_v9 = vld [vmem:[%s359_s2] ss:$0 sm:$0xff] }
   0x5   :  { %214 = vmatmul.msk.bf16.vlgmr.msra.gmra.mxu0 %vm83_vm0, %v222_v1  ;;  %216 = vmatmul.msk.bf16.vlgmr.msra.gmra.mxu1 %vm83_vm0, %v224_v2 }
   0x6   :  { %218 = vmatmul.msk.bf16.vlgmr.msra.gmra.mxu2 %vm83_vm0, %v226_v3  ;;  %220 = vmatmul.msk.bf16.vlgmr.msra.gmra.mxu3 %vm83_vm0, %v228_v4 }
  0x15   :  { %215 = vmatmul.msk.bf16.gmra.mxu0 %vm83_vm0, %v223_v5  ;;  %217 = vmatmul.msk.bf16.gmra.mxu1 %vm83_vm0, %v225_v6 }
  0x16   :  { %219 = vmatmul.msk.bf16.gmra.mxu2 %vm83_vm0, %v227_v7  ;;  %221 = vmatmul.msk.bf16.gmra.mxu3 %vm83_vm0, %v229_v8 }
  0x82   :  { %v117_v10 = vpop.f32.mrf.mxu0  ;;  %v127_v11 = vpop.f32.mrf.mxu1 }
  0x83   :  { %v118_v12 = vadd.f32 %v234_v9, %v117_v10  ;;  %v128_v13 = vadd.f32 %v234_v9, %v127_v11 }
  0x85   :  { %158 = vst.msk [vmem:[%s360_s3] sm:$0xff] %vm157_vm1, %v118_v12 }
  0x86   :  { %162 = vst.msk [vmem:[%s360_s3 + $0x20] sm:$0xff] %vm157_vm1, %v128_v13 }
  0x89   :  { %v137_v14 = vpop.f32.mrf.mxu2  ;;  %v147_v15 = vpop.f32.mrf.mxu3 }
  0x8a   :  { %v138_v16 = vadd.f32 %v234_v9, %v137_v14  ;;  %v148_v17 = vadd.f32 %v234_v9, %v147_v15  ;;  %v119_v18 = vpop.f32.mrf.mxu0  ;;  %v129_v19 = vpop.f32.mrf.mxu1 }
  0x8b   :  { %v120_v20 = vadd.f32 %v234_v9, %v119_v18  ;;  %v130_v21 = vadd.f32 %v234_v9, %v129_v19 }
  0x8c   :  { %166 = vst.msk [vmem:[%s360_s3 + $0x40] sm:$0xff] %vm157_vm1, %v138_v16 }
  0x8d   :  { %170 = vst.msk [vmem:[%s360_s3 + $0x60] sm:$0xff] %vm157_vm1, %v148_v17 }
  0x8e   :  { %159 = vst.msk [vmem:[%s360_s3 + $0x8] sm:$0xff] %vm157_vm1, %v120_v20 }
  0x8f   :  { %163 = vst.msk [vmem:[%s360_s3 + $0x28] sm:$0xff] %vm157_vm1, %v130_v21 }
  0x91   :  { %v139_v22 = vpop.f32.mrf.mxu2  ;;  %v149_v23 = vpop.f32.mrf.mxu3 }
  0x92   :  { %v140_v24 = vadd.f32 %v234_v9, %v139_v22  ;;  %v150_v25 = vadd.f32 %v234_v9, %v149_v23  ;;  %v122_v26 = vpop.f32.mrf.mxu0  ;;  %v132_v27 = vpop.f32.mrf.mxu1 }
  0x93   :  { %v123_v28 = vadd.f32 %v234_v9, %v122_v26  ;;  %v133_v29 = vadd.f32 %v234_v9, %v132_v27 }
  0x94   :  { %167 = vst.msk [vmem:[%s360_s3 + $0x48] sm:$0xff] %vm157_vm1, %v140_v24 }
  0x95   :  { %171 = vst.msk [vmem:[%s360_s3 + $0x68] sm:$0xff] %vm157_vm1, %v150_v25 }
  0x96   :  { %160 = vst.msk [vmem:[%s360_s3 + $0x10] sm:$0xff] %vm157_vm1, %v123_v28 }
  0x97   :  { %164 = vst.msk [vmem:[%s360_s3 + $0x30] sm:$0xff] %vm157_vm1, %v133_v29 }
  0x99   :  { %v142_v30 = vpop.f32.mrf.mxu2  ;;  %v152_v31 = vpop.f32.mrf.mxu3 }
  0x9a   :  { %v143_v32 = vadd.f32 %v234_v9, %v142_v30  ;;  %v153_v33 = vadd.f32 %v234_v9, %v152_v31  ;;  %v124_v34 = vpop.f32.mrf.mxu0  ;;  %v134_v35 = vpop.f32.mrf.mxu1 }
  0x9b   :  { %v125_v36 = vadd.f32 %v234_v9, %v124_v34  ;;  %v135_v37 = vadd.f32 %v234_v9, %v134_v35 }
  0x9c   :  { %168 = vst.msk [vmem:[%s360_s3 + $0x50] sm:$0xff] %vm157_vm1, %v143_v32 }
  0x9d   :  { %172 = vst.msk [vmem:[%s360_s3 + $0x70] sm:$0xff] %vm157_vm1, %v153_v33 }
  0x9e   :  { %161 = vst.msk [vmem:[%s360_s3 + $0x18] sm:$0xff] %vm157_vm1, %v125_v36 }
  0x9f   :  { %165 = vst.msk [vmem:[%s360_s3 + $0x38] sm:$0xff] %vm157_vm1, %v135_v37 }
  0xa1   :  { %v144_v38 = vpop.f32.mrf.mxu2  ;;  %v154_v39 = vpop.f32.mrf.mxu3 }
  0xa2   :  { %v145_v40 = vadd.f32 %v234_v9, %v144_v38  ;;  %v155_v41 = vadd.f32 %v234_v9, %v154_v39 }
  0xa4   :  { %169 = vst.msk [vmem:[%s360_s3 + $0x58] sm:$0xff] %vm157_vm1, %v145_v40 }
  0xa5   :  { %173 = vst.msk [vmem:[%s360_s3 + $0x78] sm:$0xff] %vm157_vm1, %v155_v41 }

</bundles_post_ra>
